<compile_context>
chip_gen: v5e
topology: v5e:2x2
jax: 0.10.0
libtpu: 0.0.40
codegen_flags: <defaults>
</compile_context>

<pallas_src>
import functools

import jax
import jax.numpy as jnp
from jax.experimental import pallas as pl
from jax.experimental.pallas import tpu as pltpu


def _make_fused_mlp_kernel(num_layers: int, compute_dtype):
    """Fused MLP kernel, feature-major (transposed) layout.

    Ref order: (xT, w0, b0, w1, b1, ..., w_{L-1}, b_{L-1}, outT).
      xT   : (Din, B)        bf16/f32 — batch on the 128-lane axis
      w_i  : (Dout_i, Din_i) bf16     — PyTorch-native (out, in) layout
      b_i  : (Dout_i, 1)     f32      — broadcasts over the batch (lane) axis
      outT : (Dout_last, B)  f32      — lane-dense output store
    ReLU after every layer except the last (matches Mlp.forward).
    """

    def kernel(*refs):
        x_ref = refs[0]
        o_ref = refs[-1]
        h = x_ref[...]
        for i in range(num_layers):
            w = refs[1 + 2 * i][...]      # (Dout_i, Din_i)
            b = refs[2 + 2 * i][...]      # (Dout_i, 1), f32
            acc = jnp.dot(w, h, preferred_element_type=jnp.float32) + b
            if i < num_layers - 1:
                h = jnp.maximum(acc, 0.0).astype(compute_dtype)
            else:
                h = acc                    # last layer: no ReLU, keep f32
        o_ref[...] = h.astype(o_ref.dtype)

    return kernel


def _fused_mlp_pallas(xt, params, batch_blocks):
    """Entire MLP forward as a single Pallas TPU kernel.

    xt: (Din, B) feature-major input (batch on lanes).
    params: list of (w: (Dout, Din), b: (Dout, 1)).
    Returns (Dout_last, B) f32.
    """
    Din, B = xt.shape
    num_layers = len(params)
    Dout_last = params[-1][0].shape[0]

    flat_inputs = [xt]
    flops = 0
    bytes_accessed = xt.size * xt.dtype.itemsize
    for (w, b) in params:
        flat_inputs.append(w)
        flat_inputs.append(b)
        flops += 2 * B * w.shape[0] * w.shape[1]
        bytes_accessed += w.size * w.dtype.itemsize + b.size * b.dtype.itemsize
    bytes_accessed += Dout_last * B * jnp.dtype(jnp.float32).itemsize

    kernel = _make_fused_mlp_kernel(num_layers, xt.dtype)
    cost = pl.CostEstimate(
        flops=flops, transcendentals=0, bytes_accessed=bytes_accessed)
    out_shape = jax.ShapeDtypeStruct((Dout_last, B), jnp.float32)

    if batch_blocks <= 1:
        # v5e / v6e path (single TensorCore): no grid machinery at all —
        # full arrays land in VMEM once, kernel runs once.
        vmem_spec = pl.BlockSpec(memory_space=pltpu.MemorySpace.VMEM)
        return pl.pallas_call(
            kernel,
            out_shape=out_shape,
            in_specs=[vmem_spec] * len(flat_inputs),
            out_specs=vmem_spec,
            cost_estimate=cost,
        )(*flat_inputs)

    # v7x path: split the batch (lane) axis across a parallel grid so both
    # TensorCores run.  Weights/biases use constant index_maps -> resident.
    assert B % batch_blocks == 0, "batch must divide evenly into batch_blocks"
    bblk = B // batch_blocks
    in_specs = [pl.BlockSpec((Din, bblk), lambda i: (0, i))]
    for (w, b) in params:
        in_specs.append(pl.BlockSpec(w.shape, lambda i: (0, 0)))
        in_specs.append(pl.BlockSpec(b.shape, lambda i: (0, 0)))
    return pl.pallas_call(
        kernel,
        out_shape=out_shape,
        grid=(batch_blocks,),
        in_specs=in_specs,
        out_specs=pl.BlockSpec((Dout_last, bblk), lambda i: (0, i)),
        compiler_params=pltpu.CompilerParams(
            dimension_semantics=("parallel",)),
        cost_estimate=cost,
    )(*flat_inputs)


@functools.partial(jax.jit, static_argnames=("batch_blocks", "compute_dtype"))
def mlp_forward(x, params, batch_blocks=1, compute_dtype=jnp.bfloat16):
    """Forward pass matching Mlp.forward, fused into one Pallas kernel.

    x: (B, Din) batch-major (PyTorch convention).  Returns (B, Dout) f32.
    Transposes + bf16 cast happen here in the jitted wrapper, not in-kernel.
    Set batch_blocks=2 on v7x when B >= 256 to use both TensorCores.
    """
    xt = x.T.astype(compute_dtype)            # (Din, B): batch on lanes
    out_t = _fused_mlp_pallas(xt, params, batch_blocks)
    return out_t.T                             # back to (B, Dout)


def init_mlp_params(key, input_size, hidden_sizes, output_size,
                    weight_dtype=jnp.bfloat16):
    """Init mimicking PyTorch nn.Linear default (uniform +/- 1/sqrt(fan_in)).

    Weights keep PyTorch's native (out, in) layout and are stored in bf16
    (MXU-native).  Biases are stored as (out, 1) f32 so the kernel adds them
    directly to the feature-major (D, B) activations.
    """
    params = []
    in_size = input_size
    sizes = list(hidden_sizes) + [output_size]
    for out_size in sizes:
        key, kw, kb = jax.random.split(key, 3)
        bound = 1.0 / float(in_size) ** 0.5
        w = jax.random.uniform(kw, (out_size, in_size), dtype=jnp.float32,
                               minval=-bound, maxval=bound).astype(weight_dtype)
        b = jax.random.uniform(kb, (out_size, 1), dtype=jnp.float32,
                               minval=-bound, maxval=bound)
        params.append((w, b))
        in_size = out_size
    return params


def mlp_reference(x, params, compute_dtype=jnp.bfloat16):
    """Pure-JAX reference (batch-major) using the same bf16/f32 mixed precision."""
    h = x.astype(compute_dtype)
    n = len(params)
    for i, (w, b) in enumerate(params):
        z = jnp.dot(h, w.T, preferred_element_type=jnp.float32) + b.reshape(-1)
        if i < n - 1:
            h = jnp.maximum(z, 0.0).astype(compute_dtype)
        else:
            h = z
    return h


if __name__ == "__main__":
    key = jax.random.PRNGKey(0)
    key, kx, kp = jax.random.split(key, 3)

    # Small MLP policy/critic-head shapes; batch=128 fills the lane axis so
    # every activation / the output is lane-dense in the transposed layout.
    batch = 128
    input_size = 32
    hidden_sizes = (64, 64)
    output_size = 16

    x = jax.random.normal(kx, (batch, input_size), dtype=jnp.float32)
    params = init_mlp_params(kp, input_size, hidden_sizes, output_size)

    out = mlp_forward(x, params)          # batch_blocks=1: no-grid fast path
    out = jax.block_until_ready(out)

    ref = mlp_reference(x, params)
    assert out.shape == (batch, output_size)
    assert out.dtype == jnp.float32
    assert jnp.allclose(out, ref, atol=1e-2, rtol=1e-2), \
        "mismatch vs JAX reference"

    print("KERNEL_OK")
</pallas_src>

<mosaic_0001>
module attributes {stable_mosaic.version = 11 : i64} {
  func.func @kernel(%arg0: memref<32x128xbf16, #tpu.memory_space<vmem>>, %arg1: memref<64x32xbf16, #tpu.memory_space<vmem>>, %arg2: memref<64x1xf32, #tpu.memory_space<vmem>>, %arg3: memref<64x64xbf16, #tpu.memory_space<vmem>>, %arg4: memref<64x1xf32, #tpu.memory_space<vmem>>, %arg5: memref<16x64xbf16, #tpu.memory_space<vmem>>, %arg6: memref<16x1xf32, #tpu.memory_space<vmem>>, %arg7: memref<16x128xf32, #tpu.memory_space<vmem>>) attributes {dimension_semantics = [], scalar_prefetch = 0 : i64, scratch_operands = 0 : i64, tpu.core_type = #tpu.core_type<tc>} {
    %c0 = arith.constant 0 : index
    %c0_0 = arith.constant 0 : index
    %0 = vector.load %arg0[%c0, %c0_0] : memref<32x128xbf16, #tpu.memory_space<vmem>>, vector<32x128xbf16>
    %c0_1 = arith.constant 0 : index
    %c0_2 = arith.constant 0 : index
    %1 = vector.load %arg1[%c0_1, %c0_2] : memref<64x32xbf16, #tpu.memory_space<vmem>>, vector<64x32xbf16>
    %c0_3 = arith.constant 0 : index
    %c0_4 = arith.constant 0 : index
    %2 = vector.load %arg2[%c0_3, %c0_4] : memref<64x1xf32, #tpu.memory_space<vmem>>, vector<64x1xf32>
    %cst = arith.constant dense<0.000000e+00> : vector<64x128xf32>
    %3 = tpu.matmul %1, %0, %cst {dimension_numbers = #tpu.dot_dimension_numbers<[1], [0], [0], [1], [0, 0, 1, 1], [], []>} : vector<64x32xbf16>, vector<32x128xbf16>, vector<64x128xf32> -> vector<64x128xf32>
    %4 = vector.broadcast %2 : vector<64x1xf32> to vector<64x128xf32>
    %5 = arith.addf %3, %4 : vector<64x128xf32>
    %cst_5 = arith.constant 0.000000e+00 : f32
    %6 = vector.broadcast %cst_5 : f32 to vector<64x128xf32>
    %7 = arith.maximumf %5, %6 : vector<64x128xf32>
    %8 = arith.truncf %7 : vector<64x128xf32> to vector<64x128xbf16>
    %c0_6 = arith.constant 0 : index
    %c0_7 = arith.constant 0 : index
    %9 = vector.load %arg3[%c0_6, %c0_7] : memref<64x64xbf16, #tpu.memory_space<vmem>>, vector<64x64xbf16>
    %c0_8 = arith.constant 0 : index
    %c0_9 = arith.constant 0 : index
    %10 = vector.load %arg4[%c0_8, %c0_9] : memref<64x1xf32, #tpu.memory_space<vmem>>, vector<64x1xf32>
    %cst_10 = arith.constant dense<0.000000e+00> : vector<64x128xf32>
    %11 = tpu.matmul %9, %8, %cst_10 {dimension_numbers = #tpu.dot_dimension_numbers<[1], [0], [0], [1], [0, 0, 1, 1], [], []>} : vector<64x64xbf16>, vector<64x128xbf16>, vector<64x128xf32> -> vector<64x128xf32>
    %12 = vector.broadcast %10 : vector<64x1xf32> to vector<64x128xf32>
    %13 = arith.addf %11, %12 : vector<64x128xf32>
    %cst_11 = arith.constant 0.000000e+00 : f32
    %14 = vector.broadcast %cst_11 : f32 to vector<64x128xf32>
    %15 = arith.maximumf %13, %14 : vector<64x128xf32>
    %16 = arith.truncf %15 : vector<64x128xf32> to vector<64x128xbf16>
    %c0_12 = arith.constant 0 : index
    %c0_13 = arith.constant 0 : index
    %17 = vector.load %arg5[%c0_12, %c0_13] : memref<16x64xbf16, #tpu.memory_space<vmem>>, vector<16x64xbf16>
    %c0_14 = arith.constant 0 : index
    %c0_15 = arith.constant 0 : index
    %18 = vector.load %arg6[%c0_14, %c0_15] : memref<16x1xf32, #tpu.memory_space<vmem>>, vector<16x1xf32>
    %cst_16 = arith.constant dense<0.000000e+00> : vector<16x128xf32>
    %19 = tpu.matmul %17, %16, %cst_16 {dimension_numbers = #tpu.dot_dimension_numbers<[1], [0], [0], [1], [0, 0, 1, 1], [], []>} : vector<16x64xbf16>, vector<64x128xbf16>, vector<16x128xf32> -> vector<16x128xf32>
    %20 = vector.broadcast %18 : vector<16x1xf32> to vector<16x128xf32>
    %21 = arith.addf %19, %20 : vector<16x128xf32>
    %c0_17 = arith.constant 0 : index
    %c0_18 = arith.constant 0 : index
    %22 = vector.load %arg7[%c0_17, %c0_18] : memref<16x128xf32, #tpu.memory_space<vmem>>, vector<16x128xf32>
    tpu.vector_store %arg7[%c0_17, %c0_18], %21 {strides = array<i32>} : memref<16x128xf32, #tpu.memory_space<vmem>>, vector<16x128xf32>,
    return
  }
}

</mosaic_0001>

<bundles_post_ra>
// kernel: mlp_forward.1
= control target key start
LH: loop header
LB: loop body
LE: loop exit
PB: predicated region body
PF: predicated region fallthrough
CT: control target
= control target key end

     0   :  { %v467_v2 = vmov 0   ;;  %s610_s0 = inlined_call_operand.vmem [shape: bf16[32,128], index: 0, kind: input, shape index: {}]   ;;  %s611_s1 = inlined_call_operand.vmem [shape: bf16[64,32], index: 1, kind: input, shape index: {}]   ;;  %s612_s2 = inlined_call_operand.vmem [shape: f32[64,1], index: 2, kind: input, shape index: {}]   ;;  %s613_s3 = inlined_call_operand.vmem [shape: bf16[64,64], index: 3, kind: input, shape index: {}]   ;;  %s614_s4 = inlined_call_operand.vmem [shape: f32[64,1], index: 4, kind: input, shape index: {}]   ;;  %s615_s5 = inlined_call_operand.vmem [shape: bf16[16,64], index: 5, kind: input, shape index: {}]   ;;  %s616_s6 = inlined_call_operand.vmem [shape: f32[16,1], index: 6, kind: input, shape index: {}]   ;;  %s617_s7 = inlined_call_operand.hbm [shape: f32[16,128], index: 7, kind: output, shape index: {}]  }
   0x1   :  { %v414_v0 = vld [vmem:[%s610_s0 + $0x8] sm:$0xff]  ;;  %v46_v1 = vld [vmem:[%s612_s2 + $0x30] sm:$0xff]  ;;  %438 = vset.pattern.permute.xlu0 %v467_v2  ;;  %439 = vset.pattern.permute.xlu1 %v467_v2  ;;  %v44_v3 = vld [vmem:[%s612_s2 + $0x20] sm:$0xff] }
   0x2   :  { %139 = vmatpush.bf16.msra.mxu0 %v414_v0  ;;  %80 = vperm.xlu0 %438, %v46_v1   ;;  %v413_v4 = vld [vmem:[%s610_s0] sm:$0xff]  ;;  %v42_v5 = vld [vmem:[%s612_s2 + $0x10] sm:$0xff] }
   0x3   :  { %70 = vperm.xlu1 %439, %v44_v3   ;;  %424 = vmatpush.bf16.msra.mxu1 %v414_v0  ;;  %v415_v6 = vld [vmem:[%s611_s1] sm:$0xff] }
   0x4   :  { %440 = vset.pattern.permute.xlu2 %v467_v2 }
   0x5   :  { %60 = vperm.xlu2 %440, %v42_v5  }
   0x6   :  { %12 = vsyncpa [#allocation3], 0  ;;  %140 = vmatpush.bf16.msra.mxu0 %v413_v4  ;;  %vm120_vm0 = vcmask 261120   ;;  %v418_v7 = vld [vmem:[%s611_s1 + $0x18] sm:$0xff]  ;;  %v45_v9 = vld [vmem:[%s612_s2 + $0x28] sm:$0xff]  ;;  %vm250_vm1 = vcmask 523264  }
   0x7   :  { %v47_v8 = vld [vmem:[%s612_s2 + $0x38] sm:$0xff]  ;;  %425 = vmatpush.bf16.msra.mxu1 %v413_v4  ;;  %v40_v11 = vld [vmem:[%s612_s2] sm:$0xff]  ;;  %v41_v12 = vld [vmem:[%s612_s2 + $0x8] sm:$0xff]  ;;  %s468_s29 = smov [#allocation2]   ;;  %s348_s9 = sshll.u32 %s617_s7, 4  ;;  %s349_s9 = int_to_ptr.hbm [resolvable:$true] %s348_s9 }
   0x8   :  { %v43_v10 = vld [vmem:[%s612_s2 + $0x18] sm:$0xff]  ;;  %v188_v13 = vld [vmem:[%s614_s4 + $0x30] sm:$0xff]  ;;  %v416_v14 = vld [vmem:[%s611_s1 + $0x8] sm:$0xff]  ;;  %s346_s30 = sshll.u32 %s468_s29, 4  ;;  %s470_s10 = smov 8   ;;  %s347_s30 = int_to_ptr.vmem [resolvable:$true] %s346_s30 }
   0x9   :  { %384 = vmatmul.msk.bf16.vlgmr.msra.gmra.mxu0 %vm120_vm0, %v415_v6  ;;  %v189_v15 = vld [vmem:[%s614_s4 + $0x38] sm:$0xff]  ;;  %v186_v16 = vld [vmem:[%s614_s4 + $0x20] sm:$0xff]  ;;  %v187_v17 = vld [vmem:[%s614_s4 + $0x28] sm:$0xff] }
   0xa   :  { %85 = vperm.xlu0 %438, %v47_v8   ;;  %387 = vmatmul.msk.bf16.vlgmr.msra.gmra.mxu1 %vm120_vm0, %v418_v7  ;;  %v184_v18 = vld [vmem:[%s614_s4 + $0x10] sm:$0xff]  ;;  %v185_v19 = vld [vmem:[%s614_s4 + $0x18] sm:$0xff]  ;;  %v182_v20 = vld [vmem:[%s614_s4] sm:$0xff] }
   0xb   :  { %75 = vperm.xlu1 %439, %v45_v9   ;;  %v417_v21 = vld [vmem:[%s611_s1 + $0x10] sm:$0xff]  ;;  %v183_v22 = vld [vmem:[%s614_s4 + $0x8] sm:$0xff]  ;;  %v306_v23 = vld [vmem:[%s616_s6] sm:$0xff] }
   0xc   :  { %v307_v24 = vld [vmem:[%s616_s6 + $0x8] sm:$0xff]  ;;  %v419_v61 = vld [vmem:[%s613_s3] sm:$0xff]  ;;  %v421_v63 = vld [vmem:[%s613_s3 + $0x10] sm:$0xff] }
   0xd   :  { %65 = vperm.xlu2 %440, %v43_v10   ;;  %v420_v62 = vld [vmem:[%s613_s3 + $0x8] sm:$0xff]  ;;  %v422_v0 = vld [vmem:[%s613_s3 + $0x18] sm:$0xff] }
  0x12   :  { %50 = vperm.xlu0 %438, %v40_v11  }
  0x13   :  { %55 = vperm.xlu1 %439, %v41_v12  }
  0x15   :  { %222 = vperm.xlu2 %440, %v188_v13  }
  0x19   :  { %385 = vmatmul.msk.bf16.gmra.mxu0 %vm120_vm0, %v416_v14 }
  0x1a   :  { %227 = vperm.xlu0 %438, %v189_v15  }
  0x1b   :  { %212 = vperm.xlu1 %439, %v186_v16  }
  0x1d   :  { %217 = vperm.xlu2 %440, %v187_v17  }
  0x22   :  { %202 = vperm.xlu0 %438, %v184_v18  }
  0x23   :  { %207 = vperm.xlu1 %439, %v185_v19  }
  0x25   :  { %192 = vperm.xlu2 %440, %v182_v20  }
  0x29   :  { %386 = vmatmul.msk.bf16.gmra.mxu0 %vm120_vm0, %v417_v21 }
  0x2a   :  { %197 = vperm.xlu0 %438, %v183_v22  }
  0x2b   :  { %310 = vperm.xlu1 %439, %v306_v23  }
  0x2d   :  { %315 = vperm.xlu2 %440, %v307_v24  }
  0x5f   :  { %v61_v39 = vpop.permute.xlu2 %60 }
  0x67   :  { %v66_v43 = vpop.permute.xlu2 %65 }
  0x6f   :  { %v223_v4 = vpop.permute.xlu2 %222 }
  0x74   :  { %v81_v25 = vpop.permute.xlu0 %80 }
  0x75   :  { %v71_v37 = vpop.permute.xlu1 %70 }
  0x77   :  { %v218_v11 = vpop.permute.xlu2 %217 }
  0x7c   :  { %v86_v30 = vpop.permute.xlu0 %85 }
  0x7d   :  { %v76_v40 = vpop.permute.xlu1 %75 }
  0x84   :  { %v51_v51 = vpop.permute.xlu0 %50 }
  0x85   :  { %v56_v47 = vpop.permute.xlu1 %55 }
  0x86   :  { %v142_v26 = vpop.f32.mrf.mxu0 }
  0x87   :  { %v157_v27 = vpop.f32.mrf.mxu1  ;;  %v143_v55 = vadd.f32 %v142_v26, %v51_v51 }
  0x88   :  { %v158_v28 = vadd.f32 %v157_v27, %v81_v25 }
  0x89   :  { %v162_v59 = vmax.f32 %v143_v55, 0.0 }
  0x8a   :  { %v168_v32 = vmax.f32 %v158_v28, 0.0 }
  0x8c   :  { %v228_v3 = vpop.permute.xlu0 %227 }
  0x8d   :  { %v213_v7 = vpop.permute.xlu1 %212 }
  0x8e   :  { %v144_v29 = vpop.f32.mrf.mxu0 }
  0x8f   :  { %v159_v31 = vpop.f32.mrf.mxu1  ;;  %v145_v52 = vadd.f32 %v144_v29, %v56_v47 }
  0x90   :  { %v160_v33 = vadd.f32 %v159_v31, %v86_v30  ;;  %v193_v30 = vpop.permute.xlu2 %192 }
  0x91   :  { %v163_v57 = vmax.f32 %v145_v52, 0.0 }
  0x92   :  { %v169_v34 = vmax.f32 %v160_v33, 0.0 }
  0x93   :  { %v170_v60 = vpack.c.bf16 %v163_v57, %v162_v59 }
  0x94   :  { %v173_v35 = vpack.c.bf16 %v169_v34, %v168_v32  ;;  %v203_v9 = vpop.permute.xlu0 %202 }
  0x95   :  { %v208_v19 = vpop.permute.xlu1 %207 }
  0x96   :  { %v147_v36 = vpop.f32.mrf.mxu0  ;;  %267 = vmatpush.bf16.msrb.mxu1 %v173_v35  ;;  %426 = vmatpush.bf16.msra.mxu2 %v173_v35 }
  0x97   :  { %427 = vmatpush.bf16.msra.mxu3 %v173_v35  ;;  %v148_v48 = vadd.f32 %v147_v36, %v61_v39 }
  0x99   :  { %v164_v56 = vmax.f32 %v148_v48, 0.0 }
  0x9c   :  { %v198_v26 = vpop.permute.xlu0 %197 }
  0x9e   :  { %v149_v38 = vpop.f32.mrf.mxu0 }
  0x9f   :  { %v150_v45 = vadd.f32 %v149_v38, %v66_v43  ;;  %v311_v38 = vpop.permute.xlu1 %310 }
  0xa1   :  { %v165_v53 = vmax.f32 %v150_v45, 0.0 }
  0xa3   :  { %v171_v58 = vpack.c.bf16 %v165_v53, %v164_v56 }
  0xa6   :  { %v152_v41 = vpop.f32.mrf.mxu0 }
  0xa7   :  { %v153_v42 = vadd.f32 %v152_v41, %v71_v37  ;;  %v423_v37 = vld [vmem:[%s615_s5] sm:$0xff]  ;;  %v316_v41 = vpop.permute.xlu2 %315  ;;  %s469_s5 = smov 128  }
  0xa9   :  { %v166_v49 = vmax.f32 %v153_v42, 0.0 }
  0xae   :  { %v154_v44 = vpop.f32.mrf.mxu0 }
  0xaf   :  { %v155_v46 = vadd.f32 %v154_v44, %v76_v40 }
  0xb1   :  { %v167_v50 = vmax.f32 %v155_v46, 0.0 }
  0xb3   :  { %v172_v54 = vpack.c.bf16 %v167_v50, %v166_v49 }
  0xb5   :  { %268 = vmatpush.bf16.msrb.mxu1 %v172_v54  ;;  %428 = vmatpush.bf16.msra.mxu2 %v172_v54 }
  0xb6   :  { %429 = vmatpush.bf16.msra.mxu3 %v172_v54 }
  0xb9   :  { %269 = vmatpush.bf16.msrb.mxu1 %v171_v58  ;;  %430 = vmatpush.bf16.msra.mxu2 %v171_v58 }
  0xba   :  { %431 = vmatpush.bf16.msra.mxu3 %v171_v58 }
  0xbd   :  { %270 = vmatpush.bf16.msrb.mxu1 %v170_v60  ;;  %432 = vmatpush.bf16.msra.mxu2 %v170_v60 }
  0xbe   :  { %433 = vmatpush.bf16.msra.mxu3 %v170_v60 }
  0xc0   :  { %404 = vmatmul.msk.bf16.vlgmr.msrb.gmra.mxu1 %vm250_vm1, %v419_v61  ;;  %405 = vmatmul.msk.bf16.vlgmr.msra.gmra.mxu2 %vm250_vm1, %v420_v62 }
  0xc1   :  { %406 = vmatmul.msk.bf16.vlgmr.msra.gmra.mxu3 %vm250_vm1, %v421_v63 }
  0xd1   :  { %407 = vmatmul.msk.bf16.gmra.mxu3 %vm250_vm1, %v422_v0 }
 0x13d   :  { %v272_v8 = vpop.f32.mrf.mxu1 }
 0x13e   :  { %v273_v31 = vadd.f32 %v272_v8, %v193_v30 }
 0x140   :  { %v292_v35 = vmax.f32 %v273_v31, 0.0 }
 0x143   :  { %v277_v5 = vpop.f32.mrf.mxu2 }
 0x144   :  { %v282_v1 = vpop.f32.mrf.mxu3  ;;  %v278_v24 = vadd.f32 %v277_v5, %v203_v9 }
 0x145   :  { %v283_v16 = vadd.f32 %v282_v1, %v213_v7  ;;  %v274_v23 = vpop.f32.mrf.mxu1 }
 0x146   :  { %v275_v27 = vadd.f32 %v274_v23, %v198_v26  ;;  %v294_v32 = vmax.f32 %v278_v24, 0.0 }
 0x147   :  { %v296_v25 = vmax.f32 %v283_v16, 0.0 }
 0x148   :  { %v293_v33 = vmax.f32 %v275_v27, 0.0 }
 0x14a   :  { %v300_v36 = vpack.c.bf16 %v293_v33, %v292_v35 }
 0x14b   :  { %v279_v15 = vpop.f32.mrf.mxu2 }
 0x14c   :  { %v284_v2 = vpop.f32.mrf.mxu3  ;;  %v280_v20 = vadd.f32 %v279_v15, %v208_v19 }
 0x14d   :  { %v285_v13 = vadd.f32 %v284_v2, %v218_v11 }
 0x14e   :  { %v295_v28 = vmax.f32 %v280_v20, 0.0 }
 0x14f   :  { %v297_v21 = vmax.f32 %v285_v13, 0.0 }
 0x150   :  { %v301_v34 = vpack.c.bf16 %v295_v28, %v294_v32 }
 0x151   :  { %v302_v29 = vpack.c.bf16 %v297_v21, %v296_v25 }
 0x154   :  { %v287_v6 = vpop.f32.mrf.mxu3 }
 0x155   :  { %v288_v10 = vadd.f32 %v287_v6, %v223_v4 }
 0x157   :  { %v298_v17 = vmax.f32 %v288_v10, 0.0 }
 0x15c   :  { %v289_v12 = vpop.f32.mrf.mxu3 }
 0x15d   :  { %v290_v14 = vadd.f32 %v289_v12, %v228_v3 }
 0x15f   :  { %v299_v18 = vmax.f32 %v290_v14, 0.0 }
 0x161   :  { %v303_v22 = vpack.c.bf16 %v299_v18, %v298_v17 }
 0x163   :  { %330 = vmatpush.bf16.msrb.mxu2 %v303_v22 }
 0x167   :  { %331 = vmatpush.bf16.msrb.mxu2 %v302_v29 }
 0x16b   :  { %332 = vmatpush.bf16.msrb.mxu2 %v301_v34 }
 0x16f   :  { %333 = vmatpush.bf16.msrb.mxu2 %v300_v36 }
 0x172   :  { %412 = vmatmul.msk.bf16.vlgmr.msrb.gmra.mxu2 %vm250_vm1, %v423_v37 }
 0x1f5   :  { %v335_v39 = vpop.f32.mrf.mxu2 }
 0x1f6   :  { %v336_v40 = vadd.f32 %v335_v39, %v311_v38 }
 0x1f8   :  { %340 = vst [vmem:[#allocation2] sm:$0xff] %v336_v40 }
 0x1fd   :  { %v337_v42 = vpop.f32.mrf.mxu2 }
 0x1fe   :  { %v338_v43 = vadd.f32 %v337_v42, %v316_v41 }
 0x200   :  { %341 = vst [vmem:[#allocation2 + $0x8] sm:$0xff] %v338_v43 }
 0x201   :  { %354 = dma.vmem_to_hbm [thread:$0]  %s347_s30, 256, %s349_s9, [#allocation3], %s469_s5, %s469_s5, %s470_s10  }
 0x202   :  { %465 = dma.done.wait [#allocation3], 256  }
 0x203   :  { %466 = vsyncadd [#allocation3], 4294967040 }
 0x204   :  { %359 = vsyncpa [#allocation3], 1 }

</bundles_post_ra>
